<compile_context>
chip_gen: v6e
topology: v6e:2x2x1
jax: 0.10.0
libtpu: 0.0.40
codegen_flags: <defaults>
</compile_context>

<pallas_src>
import functools

import jax
import jax.numpy as jnp
from jax.experimental import pallas as pl
from jax.experimental.pallas import tpu as pltpu

PARAM_ORDER = ("w1", "b1", "a1", "wd", "b2", "a2", "w3", "b3")


def _residual_kernel(x_hbm, m_ref, w1_ref, b1_ref, a1_ref, wd_ref, b2_ref,
                     a2_ref, w3_ref, b3_ref, o_ref, act_ref, load_sem, *, W):
    C, TR = act_ref.shape
    i = pl.program_id(0)          # spatial tile axis ("parallel")
    b = pl.program_id(1)          # residual-block chain axis ("arbitrary")

    # One-shot load of this tile's input straight from HBM into the resident
    # f32 carry; x is never held in VMEM for the remaining B-1 block steps.
    @pl.when(b == 0)
    def _load_input():
        cp = pltpu.make_async_copy(
            x_hbm.at[:, pl.ds(i * TR, TR)], act_ref, load_sem)
        cp.start()
        cp.wait()

    xf = act_ref[...]                                          # (C, TR) f32

    # --- ConvBlock #1: 1x1 conv (C->G, BN scale folded) + bias + PReLU -------
    y = jnp.dot(w1_ref[...], xf.astype(jnp.bfloat16),
                preferred_element_type=jnp.float32)            # (G, TR) f32
    y = y + b1_ref[...]
    y = jnp.where(y > 0, y, a1_ref[...] * y)

    # --- ConvBlock #2: depthwise 3x3 (stride 1, pad 1) + bias + PReLU --------
    # Lane rolls + precomputed 0/1 boundary masks (rows: w>=1, w<=W-2, h>=1,
    # h<=H-2) replace the padded-scratch store/reload.
    mwl = m_ref[0:1, :]
    mwr = m_ref[1:2, :]
    mh0 = m_ref[2:3, :]
    mh2 = m_ref[3:4, :]
    taps = [wd_ref[:, k:k + 1] for k in range(9)]              # (G,1), s2 folded
    cols = (pltpu.roll(y, 1, axis=1) * mwl,                    # source col w-1
            y,                                                 # source col w
            pltpu.roll(y, TR - 1, axis=1) * mwr)               # source col w+1
    acc = None
    for dy in range(3):                                        # 3 independent
        shift = ((1 - dy) * W) % TR                            # partial sums
        part = None
        for dx in range(3):
            src = cols[dx] if dy == 1 else pltpu.roll(cols[dx], shift, axis=1)
            term = taps[dy * 3 + dx] * src
            part = term if part is None else part + term
        if dy == 0:
            part = part * mh0                                  # source row h-1
        elif dy == 2:
            part = part * mh2                                  # source row h+1
        acc = part if acc is None else acc + part
    z = acc + b2_ref[...]
    z = jnp.where(z > 0, z, a2_ref[...] * z)

    # --- LinearBlock: 1x1 conv (G->C, BN scale folded) + bias ----------------
    out = jnp.dot(w3_ref[...], z.astype(jnp.bfloat16),
                  preferred_element_type=jnp.float32)          # (C, TR) f32
    out = out + b3_ref[...]

    # --- residual add; carry stays resident in VMEM across the block chain ---
    act_ref[...] = xf + out

    @pl.when(b == pl.num_programs(1) - 1)
    def _store():
        o_ref[...] = act_ref[...].astype(o_ref.dtype)          # lane-dense store


def residual_forward(x_nchw, block_params):
    """Residual.forward: num_block DepthWise(residual=True) blocks fused into a
    single pallas_call; grid = (row tiles, block chain)."""
    N, C, H, W = x_nchw.shape
    B = len(block_params)
    G = block_params[0]["w1"].shape[0]
    R = N * H * W

    # NCHW -> (C, N*H*W): channels on sublanes, long spatial axis on lanes.
    x2 = jnp.transpose(x_nchw, (1, 0, 2, 3)).reshape(C, R).astype(jnp.float32)

    # Row tiles = whole images (3x3 halo stays tile-local); target >=256 lanes
    # (MXU result width on v6e/v7x; 128 saturates v5e); fall back to one tile.
    hw = H * W
    imgs_per_tile = N
    target = min(R, 256)
    for cand in range(1, N + 1):
        if N % cand == 0 and (cand * hw) % 128 == 0 and cand * hw >= target:
            imgs_per_tile = cand
            break
    TR = imgs_per_tile * hw
    num_tiles = R // TR

    # Depthwise boundary masks, built once on the wrapper side: (4, R) f32.
    lane = jnp.arange(R, dtype=jnp.int32)
    wi = lane % W
    hi = (lane // W) % H
    masks = jnp.stack([(wi >= 1), (wi <= W - 2), (hi >= 1), (hi <= H - 2)],
                      axis=0).astype(jnp.float32)

    # Per-block params stacked along a leading (squeezed) block axis.
    stacked = {k: jnp.stack([p[k] for p in block_params], axis=0)
               for k in PARAM_ORDER}

    def stacked_spec(arr):
        n = arr.ndim - 1
        return pl.BlockSpec((None,) + arr.shape[1:],
                            lambda i, b, n=n: (b,) + (0,) * n)

    # Explicit scoped-VMEM budget from the per-step live set (64 MiB cap: v7x).
    param_bytes = sum(int(v[0].size) * v[0].dtype.itemsize
                      for v in stacked.values())
    live_bytes = (C * TR * 4                # activation carry
                  + 2 * C * TR * 4          # double-buffered output block
                  + 2 * 4 * TR * 4          # double-buffered mask block
                  + 2 * param_bytes         # double-buffered per-block params
                  + 12 * G * TR * 4)        # y/z/cols/partials temporaries
    vmem_limit = int(min(64 << 20, max(16 << 20, 4 * live_bytes)))

    kernel = functools.partial(_residual_kernel, W=W)

    out2 = pl.pallas_call(
        kernel,
        out_shape=jax.ShapeDtypeStruct((C, R), jnp.float32),
        grid=(num_tiles, B),
        in_specs=[pl.BlockSpec(memory_space=pl.ANY),            # x stays in HBM
                  pl.BlockSpec((4, TR), lambda i, b: (0, i))]   # boundary masks
                 + [stacked_spec(stacked[k]) for k in PARAM_ORDER],
        out_specs=pl.BlockSpec((C, TR), lambda i, b: (0, i)),
        scratch_shapes=[pltpu.VMEM((C, TR), jnp.float32),       # activation carry
                        pltpu.SemaphoreType.DMA],               # input-load sem
        compiler_params=pltpu.CompilerParams(
            dimension_semantics=("parallel", "arbitrary"),
            vmem_limit_bytes=vmem_limit),
    )(x2, masks, *[stacked[k] for k in PARAM_ORDER])

    return jnp.transpose(out2.reshape(C, N, H, W), (1, 0, 2, 3)).astype(
        x_nchw.dtype)


# ------------------------- parameter construction -------------------------

def _fold_bn(kg, kb, km, kv, n):
    eps = 1e-5
    gamma = jax.random.uniform(kg, (n,), jnp.float32, 0.5, 1.5)
    beta = 0.1 * jax.random.normal(kb, (n,), jnp.float32)
    mean = 0.1 * jax.random.normal(km, (n,), jnp.float32)
    var = jax.random.uniform(kv, (n,), jnp.float32, 0.5, 1.5)
    scale = gamma / jnp.sqrt(var + eps)
    bias = beta - mean * scale
    return scale, bias


def init_block_params(key, c, g):
    ks = jax.random.split(key, 17)
    # Conv2d(c, g, 1x1, bias=False): weight (g, c)
    w1 = 0.2 * jax.random.normal(ks[0], (g, c), jnp.float32)
    s1, b1 = _fold_bn(ks[1], ks[2], ks[3], ks[4], g)
    a1 = jax.random.uniform(ks[5], (g,), jnp.float32, 0.1, 0.4)   # PReLU slopes
    # Conv2d(g, g, 3x3, groups=g, bias=False): weight (g, 3, 3)
    wd = 0.2 * jax.random.normal(ks[6], (g, 3, 3), jnp.float32)
    s2, b2 = _fold_bn(ks[7], ks[8], ks[9], ks[10], g)
    a2 = jax.random.uniform(ks[11], (g,), jnp.float32, 0.1, 0.4)
    # Conv2d(g, c, 1x1, bias=False): weight (c, g)
    w3 = 0.2 * jax.random.normal(ks[12], (c, g), jnp.float32)
    s3, b3 = _fold_bn(ks[13], ks[14], ks[15], ks[16], c)
    # Fold BN scales into the conv weights (free wrapper work); keep biases.
    return {
        "w1": (w1 * s1[:, None]).astype(jnp.bfloat16),          # (g, c) bf16
        "b1": b1[:, None], "a1": a1[:, None],
        "wd": wd.reshape(g, 9) * s2[:, None],                   # (g, 9) f32, dy*3+dx
        "b2": b2[:, None], "a2": a2[:, None],
        "w3": (w3 * s3[:, None]).astype(jnp.bfloat16),          # (c, g) bf16
        "b3": b3[:, None],
    }


# ------------------------------- reference --------------------------------

def residual_reference(x_nchw, block_params):
    x = jnp.transpose(x_nchw, (0, 2, 3, 1)).astype(jnp.float32)   # NHWC, f32 carry
    N, H, W, C = x.shape
    for p in block_params:
        y = jnp.einsum("nhwc,gc->nhwg", x.astype(jnp.bfloat16), p["w1"],
                       preferred_element_type=jnp.float32)
        y = y + p["b1"][:, 0]
        y = jnp.where(y > 0, y, p["a1"][:, 0] * y)
        yp = jnp.pad(y, ((0, 0), (1, 1), (1, 1), (0, 0)))
        acc = None
        for dy in range(3):
            part = None
            for dx in range(3):
                term = yp[:, dy:dy + H, dx:dx + W, :] * p["wd"][:, dy * 3 + dx]
                part = term if part is None else part + term
            acc = part if acc is None else acc + part
        z = acc + p["b2"][:, 0]
        z = jnp.where(z > 0, z, p["a2"][:, 0] * z)
        out = jnp.einsum("nhwg,cg->nhwc", z.astype(jnp.bfloat16), p["w3"],
                         preferred_element_type=jnp.float32)
        out = out + p["b3"][:, 0]
        x = x + out
    return jnp.transpose(x, (0, 3, 1, 2))


if __name__ == "__main__":
    N, C, H, W = 2, 8, 8, 8          # small NCHW input (PyTorch convention)
    GROUPS, NUM_BLOCK = 16, 2        # Residual(c=8, num_block=2, groups=16)

    key = jax.random.PRNGKey(0)
    kx, kp = jax.random.split(key)
    x = jax.random.normal(kx, (N, C, H, W), jnp.float32)
    params = [init_block_params(k, C, GROUPS)
              for k in jax.random.split(kp, NUM_BLOCK)]

    out = jax.block_until_ready(residual_forward(x, params))
    ref = jax.block_until_ready(residual_reference(x, params))

    assert out.shape == (N, C, H, W), out.shape
    # Both implementations use bf16 MXU operands, so the tolerance is sized to
    # one bf16 ulp of the largest activation propagated through one 1x1 conv
    # (~4 * 2^-7 * |w| ~ 3e-2 worst case), not f32 epsilon.
    max_err = float(jnp.max(jnp.abs(out - ref)))
    mean_err = float(jnp.mean(jnp.abs(out - ref)))
    assert jnp.allclose(out, ref, atol=3e-2, rtol=3e-2), (max_err, mean_err)
    assert mean_err < 2e-3, (max_err, mean_err)
    print("KERNEL_OK")
</pallas_src>

<mosaic_0001>
module attributes {stable_mosaic.version = 11 : i64} {
  func.func @_residual_kernel(%arg0: i32, %arg1: i32, %arg2: memref<8x128xf32, #tpu.memory_space<any>>, %arg3: memref<4x128xf32, #tpu.memory_space<vmem>>, %arg4: memref<1x16x8xbf16, #tpu.memory_space<vmem>>, %arg5: memref<1x16x1xf32, #tpu.memory_space<vmem>>, %arg6: memref<1x16x1xf32, #tpu.memory_space<vmem>>, %arg7: memref<1x16x9xf32, #tpu.memory_space<vmem>>, %arg8: memref<1x16x1xf32, #tpu.memory_space<vmem>>, %arg9: memref<1x16x1xf32, #tpu.memory_space<vmem>>, %arg10: memref<1x8x16xbf16, #tpu.memory_space<vmem>>, %arg11: memref<1x8x1xf32, #tpu.memory_space<vmem>>, %arg12: memref<8x128xf32, #tpu.memory_space<vmem>>, %arg13: memref<8x128xf32, #tpu.memory_space<vmem>>, %arg14: memref<!tpu.dma_semaphore, #tpu.memory_space<semaphore_mem>>) attributes {dimension_semantics = [#tpu.dimension_semantics<parallel>, #tpu.dimension_semantics<arbitrary>], iteration_bounds = array<i64: 1, 2>, scalar_prefetch = 0 : i64, scratch_operands = 2 : i64, tpu.core_type = #tpu.core_type<tc>, window_params = [{}, {transform_indices = @transform_1, window_bounds = array<i64: 4, 128>}, {transform_indices = @transform_2, window_bounds = array<i64: 1, 16, 8>}, {transform_indices = @transform_3, window_bounds = array<i64: 1, 16, 1>}, {transform_indices = @transform_4, window_bounds = array<i64: 1, 16, 1>}, {transform_indices = @transform_5, window_bounds = array<i64: 1, 16, 9>}, {transform_indices = @transform_6, window_bounds = array<i64: 1, 16, 1>}, {transform_indices = @transform_7, window_bounds = array<i64: 1, 16, 1>}, {transform_indices = @transform_8, window_bounds = array<i64: 1, 8, 16>}, {transform_indices = @transform_9, window_bounds = array<i64: 1, 8, 1>}, {transform_indices = @transform_10, window_bounds = array<i64: 8, 128>}]} {
    %c0_i32 = arith.constant 0 : i32
    %0 = arith.cmpi eq, %arg1, %c0_i32 : i32
    %1 = arith.extui %0 : i1 to i32
    %c0_i32_0 = arith.constant 0 : i32
    %2 = arith.cmpi ne, %1, %c0_i32_0 : i32
    scf.if %2 {
      %c128_i32 = arith.constant 128 : i32
      %107 = arith.muli %arg0, %c128_i32 : i32
      %c0_i32_61 = arith.constant 0 : i32
      %108 = tpu.memref_slice %arg2[%c0_i32_61, %107] : memref<8x128xf32, #tpu.memory_space<any>> -> memref<8x128xf32, #tpu.memory_space<any>>
      tpu.enqueue_dma source(%108 : memref<8x128xf32, #tpu.memory_space<any>>) target(%arg13 : memref<8x128xf32, #tpu.memory_space<vmem>>) target_semaphore(%arg14 : memref<!tpu.dma_semaphore, #tpu.memory_space<semaphore_mem>>)
      %c0_i32_62 = arith.constant 0 : i32
      %109 = tpu.memref_slice %arg2[%c0_i32_62, %107] : memref<8x128xf32, #tpu.memory_space<any>> -> memref<8x128xf32, #tpu.memory_space<any>>
      tpu.wait_dma2 semaphore(%arg14 : memref<!tpu.dma_semaphore, #tpu.memory_space<semaphore_mem>>) src(%109 : memref<8x128xf32, #tpu.memory_space<any>>) dst(%arg13 : memref<8x128xf32, #tpu.memory_space<vmem>>)
    } else {
    }
    %c0 = arith.constant 0 : index
    %c0_1 = arith.constant 0 : index
    %3 = vector.load %arg13[%c0, %c0_1] : memref<8x128xf32, #tpu.memory_space<vmem>>, vector<8x128xf32>
    %c0_2 = arith.constant 0 : index
    %c0_3 = arith.constant 0 : index
    %c0_4 = arith.constant 0 : index
    %4 = vector.load %arg4[%c0_2, %c0_3, %c0_4] : memref<1x16x8xbf16, #tpu.memory_space<vmem>>, vector<1x16x8xbf16>
    %5 = vector.shape_cast %4 : vector<1x16x8xbf16> to vector<16x8xbf16>
    %6 = arith.truncf %3 : vector<8x128xf32> to vector<8x128xbf16>
    %cst = arith.constant dense<0.000000e+00> : vector<16x128xf32>
    %7 = tpu.matmul %5, %6, %cst {dimension_numbers = #tpu.dot_dimension_numbers<[1], [0], [0], [1], [0, 0, 1, 1], [], []>} : vector<16x8xbf16>, vector<8x128xbf16>, vector<16x128xf32> -> vector<16x128xf32>
    %c0_5 = arith.constant 0 : index
    %c0_6 = arith.constant 0 : index
    %c0_7 = arith.constant 0 : index
    %8 = vector.load %arg5[%c0_5, %c0_6, %c0_7] : memref<1x16x1xf32, #tpu.memory_space<vmem>>, vector<1x16x1xf32>
    %9 = vector.shape_cast %8 : vector<1x16x1xf32> to vector<16x1xf32>
    %10 = vector.broadcast %9 : vector<16x1xf32> to vector<16x128xf32>
    %11 = arith.addf %7, %10 : vector<16x128xf32>
    %cst_8 = arith.constant 0.000000e+00 : f32
    %12 = vector.broadcast %cst_8 : f32 to vector<16x128xf32>
    %13 = arith.cmpf ogt, %11, %12 : vector<16x128xf32>
    %c0_9 = arith.constant 0 : index
    %c0_10 = arith.constant 0 : index
    %c0_11 = arith.constant 0 : index
    %14 = vector.load %arg6[%c0_9, %c0_10, %c0_11] : memref<1x16x1xf32, #tpu.memory_space<vmem>>, vector<1x16x1xf32>
    %15 = vector.shape_cast %14 : vector<1x16x1xf32> to vector<16x1xf32>
    %16 = vector.broadcast %15 : vector<16x1xf32> to vector<16x128xf32>
    %17 = arith.mulf %16, %11 : vector<16x128xf32>
    %18 = arith.select %13, %11, %17 : vector<16x128xi1>, vector<16x128xf32>
    %c0_12 = arith.constant 0 : index
    %c0_13 = arith.constant 0 : index
    %19 = vector.load %arg3[%c0_12, %c0_13] : memref<4x128xf32, #tpu.memory_space<vmem>>, vector<1x128xf32>
    %c1 = arith.constant 1 : index
    %c0_14 = arith.constant 0 : index
    %20 = vector.load %arg3[%c1, %c0_14] : memref<4x128xf32, #tpu.memory_space<vmem>>, vector<1x128xf32>
    %c2 = arith.constant 2 : index
    %c0_15 = arith.constant 0 : index
    %21 = vector.load %arg3[%c2, %c0_15] : memref<4x128xf32, #tpu.memory_space<vmem>>, vector<1x128xf32>
    %c3 = arith.constant 3 : index
    %c0_16 = arith.constant 0 : index
    %22 = vector.load %arg3[%c3, %c0_16] : memref<4x128xf32, #tpu.memory_space<vmem>>, vector<1x128xf32>
    %c0_17 = arith.constant 0 : index
    %c0_18 = arith.constant 0 : index
    %c0_19 = arith.constant 0 : index
    %23 = vector.load %arg7[%c0_17, %c0_18, %c0_19] : memref<1x16x9xf32, #tpu.memory_space<vmem>>, vector<1x16x1xf32>
    %24 = vector.shape_cast %23 : vector<1x16x1xf32> to vector<16x1xf32>
    %c0_20 = arith.constant 0 : index
    %c0_21 = arith.constant 0 : index
    %c1_22 = arith.constant 1 : index
    %25 = vector.load %arg7[%c0_20, %c0_21, %c1_22] : memref<1x16x9xf32, #tpu.memory_space<vmem>>, vector<1x16x1xf32>
    %26 = vector.shape_cast %25 : vector<1x16x1xf32> to vector<16x1xf32>
    %c0_23 = arith.constant 0 : index
    %c0_24 = arith.constant 0 : index
    %c2_25 = arith.constant 2 : index
    %27 = vector.load %arg7[%c0_23, %c0_24, %c2_25] : memref<1x16x9xf32, #tpu.memory_space<vmem>>, vector<1x16x1xf32>
    %28 = vector.shape_cast %27 : vector<1x16x1xf32> to vector<16x1xf32>
    %c0_26 = arith.constant 0 : index
    %c0_27 = arith.constant 0 : index
    %c3_28 = arith.constant 3 : index
    %29 = vector.load %arg7[%c0_26, %c0_27, %c3_28] : memref<1x16x9xf32, #tpu.memory_space<vmem>>, vector<1x16x1xf32>
    %30 = vector.shape_cast %29 : vector<1x16x1xf32> to vector<16x1xf32>
    %c0_29 = arith.constant 0 : index
    %c0_30 = arith.constant 0 : index
    %c4 = arith.constant 4 : index
    %31 = vector.load %arg7[%c0_29, %c0_30, %c4] : memref<1x16x9xf32, #tpu.memory_space<vmem>>, vector<1x16x1xf32>
    %32 = vector.shape_cast %31 : vector<1x16x1xf32> to vector<16x1xf32>
    %c0_31 = arith.constant 0 : index
    %c0_32 = arith.constant 0 : index
    %c5 = arith.constant 5 : index
    %33 = vector.load %arg7[%c0_31, %c0_32, %c5] : memref<1x16x9xf32, #tpu.memory_space<vmem>>, vector<1x16x1xf32>
    %34 = vector.shape_cast %33 : vector<1x16x1xf32> to vector<16x1xf32>
    %c0_33 = arith.constant 0 : index
    %c0_34 = arith.constant 0 : index
    %c6 = arith.constant 6 : index
    %35 = vector.load %arg7[%c0_33, %c0_34, %c6] : memref<1x16x9xf32, #tpu.memory_space<vmem>>, vector<1x16x1xf32>
    %36 = vector.shape_cast %35 : vector<1x16x1xf32> to vector<16x1xf32>
    %c0_35 = arith.constant 0 : index
    %c0_36 = arith.constant 0 : index
    %c7 = arith.constant 7 : index
    %37 = vector.load %arg7[%c0_35, %c0_36, %c7] : memref<1x16x9xf32, #tpu.memory_space<vmem>>, vector<1x16x1xf32>
    %38 = vector.shape_cast %37 : vector<1x16x1xf32> to vector<16x1xf32>
    %c0_37 = arith.constant 0 : index
    %c0_38 = arith.constant 0 : index
    %c8 = arith.constant 8 : index
    %39 = vector.load %arg7[%c0_37, %c0_38, %c8] : memref<1x16x9xf32, #tpu.memory_space<vmem>>, vector<1x16x1xf32>
    %40 = vector.shape_cast %39 : vector<1x16x1xf32> to vector<16x1xf32>
    %c1_i32 = arith.constant 1 : i32
    %41 = tpu.dynamic_rotate %18 by %c1_i32 dim 1 : vector<16x128xf32>, i32 -> vector<16x128xf32>
    %42 = vector.broadcast %19 : vector<1x128xf32> to vector<16x128xf32>
    %43 = arith.mulf %41, %42 : vector<16x128xf32>
    %c127_i32 = arith.constant 127 : i32
    %44 = tpu.dynamic_rotate %18 by %c127_i32 dim 1 : vector<16x128xf32>, i32 -> vector<16x128xf32>
    %45 = vector.broadcast %20 : vector<1x128xf32> to vector<16x128xf32>
    %46 = arith.mulf %44, %45 : vector<16x128xf32>
    %c8_i32 = arith.constant 8 : i32
    %47 = tpu.dynamic_rotate %43 by %c8_i32 dim 1 : vector<16x128xf32>, i32 -> vector<16x128xf32>
    %48 = vector.broadcast %24 : vector<16x1xf32> to vector<16x128xf32>
    %49 = arith.mulf %48, %47 : vector<16x128xf32>
    %c8_i32_39 = arith.constant 8 : i32
    %50 = tpu.dynamic_rotate %18 by %c8_i32_39 dim 1 : vector<16x128xf32>, i32 -> vector<16x128xf32>
    %51 = vector.broadcast %26 : vector<16x1xf32> to vector<16x128xf32>
    %52 = arith.mulf %51, %50 : vector<16x128xf32>
    %53 = arith.addf %49, %52 : vector<16x128xf32>
    %c8_i32_40 = arith.constant 8 : i32
    %54 = tpu.dynamic_rotate %46 by %c8_i32_40 dim 1 : vector<16x128xf32>, i32 -> vector<16x128xf32>
    %55 = vector.broadcast %28 : vector<16x1xf32> to vector<16x128xf32>
    %56 = arith.mulf %55, %54 : vector<16x128xf32>
    %57 = arith.addf %53, %56 : vector<16x128xf32>
    %58 = vector.broadcast %21 : vector<1x128xf32> to vector<16x128xf32>
    %59 = arith.mulf %57, %58 : vector<16x128xf32>
    %60 = vector.broadcast %30 : vector<16x1xf32> to vector<16x128xf32>
    %61 = arith.mulf %60, %43 : vector<16x128xf32>
    %62 = vector.broadcast %32 : vector<16x1xf32> to vector<16x128xf32>
    %63 = arith.mulf %62, %18 : vector<16x128xf32>
    %64 = arith.addf %61, %63 : vector<16x128xf32>
    %65 = vector.broadcast %34 : vector<16x1xf32> to vector<16x128xf32>
    %66 = arith.mulf %65, %46 : vector<16x128xf32>
    %67 = arith.addf %64, %66 : vector<16x128xf32>
    %68 = arith.addf %59, %67 : vector<16x128xf32>
    %c120_i32 = arith.constant 120 : i32
    %69 = tpu.dynamic_rotate %43 by %c120_i32 dim 1 : vector<16x128xf32>, i32 -> vector<16x128xf32>
    %70 = vector.broadcast %36 : vector<16x1xf32> to vector<16x128xf32>
    %71 = arith.mulf %70, %69 : vector<16x128xf32>
    %c120_i32_41 = arith.constant 120 : i32
    %72 = tpu.dynamic_rotate %18 by %c120_i32_41 dim 1 : vector<16x128xf32>, i32 -> vector<16x128xf32>
    %73 = vector.broadcast %38 : vector<16x1xf32> to vector<16x128xf32>
    %74 = arith.mulf %73, %72 : vector<16x128xf32>
    %75 = arith.addf %71, %74 : vector<16x128xf32>
    %c120_i32_42 = arith.constant 120 : i32
    %76 = tpu.dynamic_rotate %46 by %c120_i32_42 dim 1 : vector<16x128xf32>, i32 -> vector<16x128xf32>
    %77 = vector.broadcast %40 : vector<16x1xf32> to vector<16x128xf32>
    %78 = arith.mulf %77, %76 : vector<16x128xf32>
    %79 = arith.addf %75, %78 : vector<16x128xf32>
    %80 = vector.broadcast %22 : vector<1x128xf32> to vector<16x128xf32>
    %81 = arith.mulf %79, %80 : vector<16x128xf32>
    %82 = arith.addf %68, %81 : vector<16x128xf32>
    %c0_43 = arith.constant 0 : index
    %c0_44 = arith.constant 0 : index
    %c0_45 = arith.constant 0 : index
    %83 = vector.load %arg8[%c0_43, %c0_44, %c0_45] : memref<1x16x1xf32, #tpu.memory_space<vmem>>, vector<1x16x1xf32>
    %84 = vector.shape_cast %83 : vector<1x16x1xf32> to vector<16x1xf32>
    %85 = vector.broadcast %84 : vector<16x1xf32> to vector<16x128xf32>
    %86 = arith.addf %82, %85 : vector<16x128xf32>
    %cst_46 = arith.constant 0.000000e+00 : f32
    %87 = vector.broadcast %cst_46 : f32 to vector<16x128xf32>
    %88 = arith.cmpf ogt, %86, %87 : vector<16x128xf32>
    %c0_47 = arith.constant 0 : index
    %c0_48 = arith.constant 0 : index
    %c0_49 = arith.constant 0 : index
    %89 = vector.load %arg9[%c0_47, %c0_48, %c0_49] : memref<1x16x1xf32, #tpu.memory_space<vmem>>, vector<1x16x1xf32>
    %90 = vector.shape_cast %89 : vector<1x16x1xf32> to vector<16x1xf32>
    %91 = vector.broadcast %90 : vector<16x1xf32> to vector<16x128xf32>
    %92 = arith.mulf %91, %86 : vector<16x128xf32>
    %93 = arith.select %88, %86, %92 : vector<16x128xi1>, vector<16x128xf32>
    %c0_50 = arith.constant 0 : index
    %c0_51 = arith.constant 0 : index
    %c0_52 = arith.constant 0 : index
    %94 = vector.load %arg10[%c0_50, %c0_51, %c0_52] : memref<1x8x16xbf16, #tpu.memory_space<vmem>>, vector<1x8x16xbf16>
    %95 = vector.shape_cast %94 : vector<1x8x16xbf16> to vector<8x16xbf16>
    %96 = arith.truncf %93 : vector<16x128xf32> to vector<16x128xbf16>
    %cst_53 = arith.constant dense<0.000000e+00> : vector<8x128xf32>
    %97 = tpu.matmul %95, %96, %cst_53 {dimension_numbers = #tpu.dot_dimension_numbers<[1], [0], [0], [1], [0, 0, 1, 1], [], []>} : vector<8x16xbf16>, vector<16x128xbf16>, vector<8x128xf32> -> vector<8x128xf32>
    %c0_54 = arith.constant 0 : index
    %c0_55 = arith.constant 0 : index
    %c0_56 = arith.constant 0 : index
    %98 = vector.load %arg11[%c0_54, %c0_55, %c0_56] : memref<1x8x1xf32, #tpu.memory_space<vmem>>, vector<1x8x1xf32>
    %99 = vector.shape_cast %98 : vector<1x8x1xf32> to vector<8x1xf32>
    %100 = vector.broadcast %99 : vector<8x1xf32> to vector<8x128xf32>
    %101 = arith.addf %97, %100 : vector<8x128xf32>
    %102 = arith.addf %3, %101 : vector<8x128xf32>
    %c0_57 = arith.constant 0 : index
    %c0_58 = arith.constant 0 : index
    %103 = vector.load %arg13[%c0_57, %c0_58] : memref<8x128xf32, #tpu.memory_space<vmem>>, vector<8x128xf32>
    tpu.vector_store %arg13[%c0_57, %c0_58], %102 {strides = array<i32>} : memref<8x128xf32, #tpu.memory_space<vmem>>, vector<8x128xf32>,
    %c1_i32_59 = arith.constant 1 : i32
    %104 = arith.cmpi eq, %arg1, %c1_i32_59 : i32
    %105 = arith.extui %104 : i1 to i32
    %c0_i32_60 = arith.constant 0 : i32
    %106 = arith.cmpi ne, %105, %c0_i32_60 : i32
    scf.if %106 {
      %c0_61 = arith.constant 0 : index
      %c0_62 = arith.constant 0 : index
      %107 = vector.load %arg13[%c0_61, %c0_62] : memref<8x128xf32, #tpu.memory_space<vmem>>, vector<8x128xf32>
      %c0_63 = arith.constant 0 : index
      %c0_64 = arith.constant 0 : index
      %108 = vector.load %arg12[%c0_63, %c0_64] : memref<8x128xf32, #tpu.memory_space<vmem>>, vector<8x128xf32>
      tpu.vector_store %arg12[%c0_63, %c0_64], %107 {strides = array<i32>} : memref<8x128xf32, #tpu.memory_space<vmem>>, vector<8x128xf32>,
    } else {
    }
    return
  }
  func.func @transform_1(%arg0: i32, %arg1: i32) -> (i32, i32) {
    %c0_i32 = arith.constant 0 : i32
    %c0_i32_0 = arith.constant 0 : i32
    return %c0_i32, %arg0 : i32, i32
  }
  func.func @transform_2(%arg0: i32, %arg1: i32) -> (i32, i32, i32) {
    %c0_i32 = arith.constant 0 : i32
    %c0_i32_0 = arith.constant 0 : i32
    %c0_i32_1 = arith.constant 0 : i32
    return %arg1, %c0_i32, %c0_i32_0 : i32, i32, i32
  }
  func.func @transform_3(%arg0: i32, %arg1: i32) -> (i32, i32, i32) {
    %c0_i32 = arith.constant 0 : i32
    %c0_i32_0 = arith.constant 0 : i32
    %c0_i32_1 = arith.constant 0 : i32
    return %arg1, %c0_i32, %c0_i32_0 : i32, i32, i32
  }
  func.func @transform_4(%arg0: i32, %arg1: i32) -> (i32, i32, i32) {
    %c0_i32 = arith.constant 0 : i32
    %c0_i32_0 = arith.constant 0 : i32
    %c0_i32_1 = arith.constant 0 : i32
    return %arg1, %c0_i32, %c0_i32_0 : i32, i32, i32
  }
  func.func @transform_5(%arg0: i32, %arg1: i32) -> (i32, i32, i32) {
    %c0_i32 = arith.constant 0 : i32
    %c0_i32_0 = arith.constant 0 : i32
    %c0_i32_1 = arith.constant 0 : i32
    return %arg1, %c0_i32, %c0_i32_0 : i32, i32, i32
  }
  func.func @transform_6(%arg0: i32, %arg1: i32) -> (i32, i32, i32) {
    %c0_i32 = arith.constant 0 : i32
    %c0_i32_0 = arith.constant 0 : i32
    %c0_i32_1 = arith.constant 0 : i32
    return %arg1, %c0_i32, %c0_i32_0 : i32, i32, i32
  }
  func.func @transform_7(%arg0: i32, %arg1: i32) -> (i32, i32, i32) {
    %c0_i32 = arith.constant 0 : i32
    %c0_i32_0 = arith.constant 0 : i32
    %c0_i32_1 = arith.constant 0 : i32
    return %arg1, %c0_i32, %c0_i32_0 : i32, i32, i32
  }
  func.func @transform_8(%arg0: i32, %arg1: i32) -> (i32, i32, i32) {
    %c0_i32 = arith.constant 0 : i32
    %c0_i32_0 = arith.constant 0 : i32
    %c0_i32_1 = arith.constant 0 : i32
    return %arg1, %c0_i32, %c0_i32_0 : i32, i32, i32
  }
  func.func @transform_9(%arg0: i32, %arg1: i32) -> (i32, i32, i32) {
    %c0_i32 = arith.constant 0 : i32
    %c0_i32_0 = arith.constant 0 : i32
    %c0_i32_1 = arith.constant 0 : i32
    return %arg1, %c0_i32, %c0_i32_0 : i32, i32, i32
  }
  func.func @transform_10(%arg0: i32, %arg1: i32) -> (i32, i32) {
    %c0_i32 = arith.constant 0 : i32
    %c0_i32_0 = arith.constant 0 : i32
    return %c0_i32, %arg0 : i32, i32
  }
}

</mosaic_0001>

<bundles_post_ra>
// kernel: tpu_custom_call.1
= control target key start
LH: loop header
LB: loop body
LE: loop exit
PB: predicated region body
PF: predicated region fallthrough
CT: control target
= control target key end

     0   :  { %s1489_s0 = inlined_call_operand.vmem [shape: f32[8,128], index: 0, kind: input, shape index: {}]   ;;  %s1490_s1 = inlined_call_operand.vmem [shape: f32[4,128], index: 1, kind: input, shape index: {}]   ;;  %s1491_s2 = inlined_call_operand.vmem [shape: bf16[2,16,8], index: 2, kind: input, shape index: {}]   ;;  %s1492_s3 = inlined_call_operand.vmem [shape: f32[2,16,1], index: 3, kind: input, shape index: {}]   ;;  %s1493_s4 = inlined_call_operand.vmem [shape: f32[2,16,1], index: 4, kind: input, shape index: {}]   ;;  %s1494_s5 = inlined_call_operand.vmem [shape: f32[2,16,9], index: 5, kind: input, shape index: {}]   ;;  %s1495_s6 = inlined_call_operand.vmem [shape: f32[2,16,1], index: 6, kind: input, shape index: {}]   ;;  %s1496_s7 = inlined_call_operand.vmem [shape: f32[2,16,1], index: 7, kind: input, shape index: {}]   ;;  %s1497_s8 = inlined_call_operand.vmem [shape: bf16[2,8,16], index: 8, kind: input, shape index: {}]   ;;  %s1498_s9 = inlined_call_operand.vmem [shape: f32[2,8,1], index: 9, kind: input, shape index: {}]   ;;  %s1499_s10 = inlined_call_operand.hbm [shape: f32[8,128], index: 10, kind: output, shape index: {}]  }
   0x1   :  { %1500 = sst [smem:[#allocation10_spill]] %s1491_s2 }
   0x2   :  { %1501 = sst [smem:[#allocation11_spill]] %s1492_s3 }
   0x3   :  { %1502 = sst [smem:[#allocation12_spill]] %s1493_s4 }
   0x4   :  { %15 = vsyncpa [#allocation5], 0  ;;  %s1311_s13 = smov 0   ;;  %s1313_s14 = smov 0  }
   0x5   :  { %s1315_s15 = smov 0  }
   0x6 LB: > { %s30_s17 = sadd.s32 1, %s1234_s14  ;;  %p1070_p1 = scmp.ge.s32.totalorder %s1238_s15, 1  ;;  %s1238_s15 = sphi %s1315_s15, %s21_s15   ;;  %s1234_s14 = sphi %s1313_s14, %s1511_s14   ;;  %s1230_s13 = sphi %s1311_s13, %s1510_s13  }
   0x7   : > { %p31_p0 = scmp.ge.s32.totalorder %s30_s17, 2  ;;  %p378_p2 = scmp.lt.s32.totalorder %s1238_s15, 3 }
   0x9   : > { %s1513_s17 = smov (%p31_p0, %s30_s17), 0  ;;  %p379_p3 = pnand %p1070_p1, %p378_p2 }
   0xa   : > { %1503 = sst [smem:[#allocation9_spill]] %s1513_s17  ;;  %p450_p4 = scmp.lt.s32.totalorder (!%p379_p3), %s1230_s13, 1 }
   0xb   : > { %382 = sbr.rel (%p379_p3) target bundleno = 735 (0x2df), region = 56  ;;  %s1504_s2 = sld [smem:[#allocation10_spill]] (!%p379_p3) }
   0xc   : > { %s1505_s3 = sld [smem:[#allocation11_spill]] (!%p379_p3)  ;;  %p1085_p5 = scmp.ne.s32.totalorder (!%p379_p3), %s1230_s13, 0 }
   0xd   : > { %s1506_s4 = sld [smem:[#allocation12_spill]] (!%p379_p3) }
  0x10   : > { %s451_s18 = scalar_select %p450_p4, %s1230_s13, 1 }
  0x12   : > { %s1099_s19 = sshll.u32 %s451_s18, 3  ;;  %s1100_s20 = sshll.u32 %s451_s18, 4 }
  0x13   : > { %s454_s23 = scalar_lea.vmem %s1504_s2, %s1099_s19  ;;  %s1340_s26 = scalar_lea.vmem %s1505_s3, %s1100_s20 }
  0x14   : > { %s1345_s29 = scalar_lea.vmem %s1506_s4, %s1100_s20  ;;  %s1350_s12 = scalar_lea.vmem %s1494_s5, %s1100_s20 }
  0x15   : > { %s1355_s21 = scalar_lea.vmem %s1495_s6, %s1100_s20  ;;  %s1360_s24 = scalar_lea.vmem %s1496_s7, %s1100_s20 }
  0x16   : > { %s1083_s25 = sshll.u32 %s451_s18, 2  ;;  %s1365_s28 = scalar_lea.vmem %s1498_s9, %s1099_s19 }
  0x17   : > { %s1370_s11 = scalar_lea.vmem %s1497_s8, %s1083_s25  ;;  %492 = sbr.rel (%p1085_p5) target bundleno = 33 (0x21), region = 60 }
  0x1c   : > { %v530_v0 = vld [vmem:[%s1489_s0] sm:$0xff] }
  0x1d   : > { %531 = vst [vmem:[#allocation2] sm:$0xff] %v530_v0 }
  0x1e   : > { %539 = vsyncadd [#allocation3], 128 }
  0x1f   : > { %1222 = dma.done.wait [#allocation3], 128 }
  0x20   : > { %1223 = vsyncadd [#allocation3], 4294967168 }
  0x21 PF: > { %vm568_vm0 = vcmask 1043456   ;;  %v1240_v2 = vmov 0.0   ;;  %vm1241_vm1 = vmmov 0   ;;  %v615_v4 = vld [vmem:[%s1345_s29] sm:$0xff]  ;;  %v1242_v5 = vmov 0   ;;  %v616_v9 = vld [vmem:[%s1345_s29 + $0x8] sm:$0xff] }
  0x22   : > { %1109 = vmatprep.subr.bf16.mxu0 %v1240_v2  ;;  %1111 = vmatprep.mubr.msk.bf16.mxu0 %vm1241_vm1, %v1240_v2  ;;  %v547_v6 = vld [vmem:[%s1340_s26] sm:$0xff]  ;;  %vm564_vm2 = vcmask 64512   ;;  %v548_v10 = vld [vmem:[%s1340_s26 + $0x8] sm:$0xff]  ;;  %v1243_v13 = vmov 1   ;;  %v1244_v14 = vmov 2   ;;  %v1245_v15 = vmov 3  }
  0x23   : > { %1168 = vset.pattern.permute.xlu1 %v1242_v5  ;;  %1167 = vset.pattern.permute.xlu0 %v1242_v5  ;;  %v1185_v8 = vld [vmem:[%s454_s23] sm:$0xff]   ;;  %v1389_v11 = vld [vmem:[%s1350_s12 + $0x8] sm:$0xff]  ;;  %s1246_s2 = smov 1   ;;  %s1247_s3 = smov 127   ;;  %v1248_v30 = vmov 4   ;;  %v1249_v31 = vmov 6  }
  0x24   : > { %v1376_v1 = vld [vmem:[#allocation2] sm:$0xff]  ;;  %619 = vperm.xlu1 %1168, %v615_v4   ;;  %551 = vperm.xlu0 %1167, %v547_v6   ;;  %v1250_v32 = vmov 5   ;;  %v1251_v33 = vmov 8   ;;  %v1252_v34 = vmov 7   ;;  %s1253_s4 = smov 8   ;;  %s1254_s18 = smov 120  }
  0x25   : > { %v546_v3 = vpack.c.bf16 %v1376_v1, %v1376_v1  ;;  %1115 = vmatprep.subr.bf16.mxu1 %v1240_v2  ;;  %1117 = vmatprep.mubr.msk.bf16.mxu1 %vm1241_vm1, %v1240_v2  ;;  %v1392_v12 = vld [vmem:[%s1350_s12] sm:$0xff]  ;;  %v818_v51 = vld [vmem:[%s1360_s24 + $0x8] sm:$0xff]  ;;  %vm841_vm7 = vcmask 130048   ;;  %p1093_p6 = scmp.ne.s32.totalorder %s1230_s13, 1 }
  0x26   : > { %v1088_v39 = vld [vmem:[%s1490_s1] ss:$0 sm:$0xff]  ;;  %v1089_v42 = vld [vmem:[%s1490_s1 + $0x1] ss:$0 sm:$0xff]  ;;  %v802_v52 = vld [vmem:[%s1355_s21 + $0x8] sm:$0xff] }
  0x27   : > { %v570_v7 = vsel %vm568_vm0, %v546_v3, 0  ;;  %v801_v49 = vld [vmem:[%s1355_s21] sm:$0xff] }
  0x28   : > { %1110 = vmatpush3.bf16.msra.mxu0 %v570_v7  ;;  %624 = vperm.xlu1 %1168, %v616_v9   ;;  %v817_v55 = vld [vmem:[%s1360_s24] sm:$0xff] }
  0x29   : > { %556 = vperm.xlu0 %1167, %v548_v10   ;;  %v835_v58 = vld [vmem:[%s1365_s28] sm:$0xff] }
  0x2b   : > { %1112 = vmatmul.mubr.msk.bf16.vlgmr.msra.gmra.mxu0 %vm564_vm2, %v1185_v8 }
  0x2c   : > { %668 = vperm.xlu1 %1168, %v1389_v11  }
  0x2d   : > { %1169 = vset.pattern.permute.xlu0 %v1243_v13 }
  0x2e   : > { %678 = vperm.xlu0 %1169, %v1392_v12  }
  0x30   : > { %1170 = vset.pattern.permute.xlu1 %v1243_v13 }
  0x31   : > { %682 = vperm.xlu1 %1170, %v1389_v11  }
  0x32   : > { %1172 = vset.pattern.permute.xlu0 %v1244_v14 }
  0x35   : > { %1171 = vset.pattern.permute.xlu1 %v1244_v14 }
  0x36   : > { %694 = vperm.xlu1 %1171, %v1392_v12  }
  0x3a   : > { %1173 = vset.pattern.permute.xlu1 %v1245_v15 }
  0x9f   : > { %v552_v16 = vpop.permute.xlu0 %551  ;;  %v620_v17 = vpop.permute.xlu1 %619 }
  0xa3   : > { %v625_v26 = vpop.permute.xlu1 %624 }
  0xa4   : > { %v557_v22 = vpop.permute.xlu0 %556 }
  0xa7   : > { %v1428_v35 = vpop.permute.xlu1 %668 }
  0xa9   : > { %v679_v37 = vpop.permute.xlu0 %678 }
  0xac   : > { %v1430_v36 = vpop.permute.xlu1 %682 }
  0xb1   : > { %v1432_v38 = vpop.permute.xlu1 %694 }
  0xeb   : > { %v606_v18 = vpop.f32.mrf.mxu0 }
  0xec   : > { %v607_v19 = vadd.f32 %v606_v18, %v552_v16 }
  0xed   : > { %v1113_v20 = vpop.f32.mrf.mxu0 }
  0xee   : > { %vm613_vm3 = vcmp.gt.f32.partialorder %v607_v19, 0.0  ;;  %v627_v21 = vmul.f32 %v620_v17, %v607_v19 }
  0xef   : > { %v609_v23 = vpop.f32.mrf.mxu0 }
  0xf0   : > { %v1398_v24 = vsel %vm613_vm3, %v607_v19, %v627_v21  ;;  %v610_v25 = vadd.f32 %v609_v23, %v557_v22 }
  0xf1   : > { %637 = vrot.lane.b32.xlu0 %v1398_v24, %s1246_s2  ;;  %v1114_v27 = vpop.f32.mrf.mxu0 }
  0xf2   : > { %vm614_vm4 = vcmp.gt.f32.partialorder %v610_v25, 0.0  ;;  %v628_v28 = vmul.f32 %v625_v26, %v610_v25  ;;  %v1090_v26 = vld [vmem:[%s1490_s1 + $0x2] ss:$0 sm:$0xff] }
  0xf4   : > { %v1401_v29 = vsel %vm614_vm4, %v610_v25, %v628_v28 }
  0xf5   : > { %647 = vrot.lane.b32.xlu0 %v1398_v24, %s1247_s3  ;;  %639 = vrot.lane.b32.xlu1 %v1401_v29, %s1246_s2 }
  0xf9   : > { %698 = vperm.xlu0 %1172, %v1389_v11   ;;  %649 = vrot.lane.b32.xlu1 %v1401_v29, %s1247_s3 }
  0xfd   : > { %1174 = vset.pattern.permute.xlu0 %v1248_v30  ;;  %712 = vperm.xlu1 %1173, %v1392_v12  }
  0xfe   : > { %722 = vperm.xlu0 %1174, %v1392_v12  }
 0x101   : > { %716 = vperm.xlu1 %1173, %v1389_v11  }
 0x102   : > { %1177 = vset.pattern.permute.xlu0 %v1249_v31 }
 0x103   : > { %756 = vperm.xlu0 %1177, %v1389_v11  }
 0x105   : > { %1175 = vset.pattern.permute.xlu1 %v1248_v30 }
 0x106   : > { %726 = vperm.xlu1 %1175, %v1389_v11  }
 0x107   : > { %1179 = vset.pattern.permute.xlu0 %v1250_v32 }
 0x108   : > { %734 = vperm.xlu0 %1179, %v1392_v12  }
 0x10a   : > { %1176 = vset.pattern.permute.xlu1 %v1249_v31 }
 0x10b   : > { %752 = vperm.xlu1 %1176, %v1392_v12  }
 0x10c   : > { %1182 = vset.pattern.permute.xlu0 %v1251_v33 }
 0x10d   : > { %786 = vperm.xlu0 %1182, %v1389_v11  }
 0x10f   : > { %1178 = vset.pattern.permute.xlu1 %v1252_v34 }
 0x110   : > { %766 = vperm.xlu1 %1178, %v1392_v12  }
 0x111   : > { %1183 = vset.pattern.permute.xlu0 %v1242_v5 }
 0x112   : > { %663 = vperm.xlu0 %1183, %v1392_v12  }
 0x114   : > { %770 = vperm.xlu1 %1178, %v1389_v11  }
 0x116   : > { %673 = vrot.lane.b32.xlu0 %v1398_v24, %s1253_s4 }
 0x118   : > { %1180 = vset.pattern.permute.xlu1 %v1250_v32 }
 0x119   : > { %738 = vperm.xlu1 %1180, %v1389_v11  }
 0x11a   : > { %761 = vrot.lane.b32.xlu0 %v1398_v24, %s1254_s18 }
 0x11d   : > { %1181 = vset.pattern.permute.xlu1 %v1251_v33 }
 0x11e   : > { %782 = vperm.xlu1 %1181, %v1392_v12  }
 0x122   : > { %675 = vrot.lane.b32.xlu1 %v1401_v29, %s1253_s4 }
 0x123   : > { %1184 = vset.pattern.permute.xlu1 %v1242_v5 }
 0x126   : > { %763 = vrot.lane.b32.xlu1 %v1401_v29, %s1254_s18 }
 0x163   : > { %v638_v40 = vpop.permute.xlu0 %637 }
 0x164   : > { %v645_v41 = vmul.f32 %v1088_v39, %v638_v40 }
 0x166   : > { %657 = vrot.lane.b32.xlu1 %v645_v41, %s1253_s4 }
 0x167   : > { %v648_v43 = vpop.permute.xlu0 %647  ;;  %v640_v44 = vpop.permute.xlu1 %639 }
 0x168   : > { %v655_v45 = vmul.f32 %v1089_v42, %v648_v43  ;;  %v646_v46 = vmul.f32 %v1088_v39, %v640_v44 }
 0x16a   : > { %689 = vrot.lane.b32.xlu0 %v655_v45, %s1253_s4  ;;  %659 = vrot.lane.b32.xlu1 %v646_v46, %s1253_s4 }
 0x16b   : > { %v650_v47 = vpop.permute.xlu1 %649 }
 0x16c   : > { %v656_v48 = vmul.f32 %v1089_v42, %v650_v47 }
 0x16e   : > { %747 = vrot.lane.b32.xlu0 %v645_v41, %s1254_s18  ;;  %691 = vrot.lane.b32.xlu1 %v656_v48, %s1253_s4 }
 0x172   : > { %777 = vrot.lane.b32.xlu0 %v655_v45, %s1254_s18  ;;  %749 = vrot.lane.b32.xlu1 %v646_v46, %s1254_s18 }
 0x174   : > { %v699_v50 = vpop.permute.xlu0 %698 }
 0x176   : > { %805 = vperm.xlu0 %1183, %v801_v49   ;;  %779 = vrot.lane.b32.xlu1 %v656_v48, %s1254_s18 }
 0x178   : > { %v713_v53 = vpop.permute.xlu1 %712 }
 0x179   : > { %v723_v54 = vpop.permute.xlu0 %722  ;;  %v719_v59 = vmul.f32 %v713_v53, %v645_v41 }
 0x17a   : > { %826 = vperm.xlu0 %1183, %v818_v51   ;;  %810 = vperm.xlu1 %1184, %v802_v52   ;;  %v729_v60 = vmul.f32 %v723_v54, %v1398_v24 }
 0x17c   : > { %v717_v56 = vpop.permute.xlu1 %716  ;;  %v731_v63 = vadd.f32 %v729_v60, %v719_v59 }
 0x17d   : > { %v720_v7 = vmul.f32 %v717_v56, %v646_v46 }
 0x17e   : > { %821 = vperm.xlu1 %1184, %v817_v55   ;;  %v757_v57 = vpop.permute.xlu0 %756 }
 0x181   : > { %v727_v61 = vpop.permute.xlu1 %726 }
 0x182   : > { %838 = vperm.xlu1 %1184, %v835_v58   ;;  %v730_v6 = vmul.f32 %v727_v61, %v1401_v29 }
 0x183   : > { %v735_v62 = vpop.permute.xlu0 %734 }
 0x184   : > { %v741_v0 = vmul.f32 %v735_v62, %v655_v45  ;;  %v732_v9 = vadd.f32 %v730_v6, %v720_v7 }
 0x186   : > { %v743_v2 = vadd.f32 %v741_v0, %v731_v63  ;;  %v753_v3 = vpop.permute.xlu1 %752 }
 0x188   : > { %v787_v12 = vpop.permute.xlu0 %786 }
 0x18b   : > { %v767_v4 = vpop.permute.xlu1 %766 }
 0x18d   : > { %v664_v14 = vpop.permute.xlu0 %663 }
 0x18f   : > { %v771_v5 = vpop.permute.xlu1 %770 }
 0x191   : > { %v674_v16 = vpop.permute.xlu0 %673 }
 0x192   : > { %v685_v21 = vmul.f32 %v679_v37, %v674_v16 }
 0x194   : > { %v739_v8 = vpop.permute.xlu1 %738 }
 0x195   : > { %v742_v10 = vmul.f32 %v739_v8, %v656_v48  ;;  %v762_v18 = vpop.permute.xlu0 %761 }
 0x196   : > { %v773_v44 = vmul.f32 %v767_v4, %v762_v18 }
 0x197   : > { %v744_v11 = vadd.f32 %v742_v10, %v732_v9 }
 0x199   : > { %v783_v13 = vpop.permute.xlu1 %782 }
 0x19d   : > { %v676_v15 = vpop.permute.xlu1 %675 }
 0x19e   : > { %v686_v34 = vmul.f32 %v1430_v36, %v676_v15 }
 0x1a1   : > { %v764_v17 = vpop.permute.xlu1 %763 }
 0x1a2   : > { %v774_v42 = vmul.f32 %v771_v5, %v764_v17  ;;  %v833_v5 = vld [vmem:[%s1370_s11] sm:$0xf] }
 0x1d8   : > { %v658_v19 = vpop.permute.xlu1 %657 }
 0x1d9   : > { %v671_v20 = vmul.f32 %v664_v14, %v658_v19 }
 0x1db   : > { %v687_v24 = vadd.f32 %v685_v21, %v671_v20 }
 0x1dc   : > { %v690_v22 = vpop.permute.xlu0 %689  ;;  %v660_v23 = vpop.permute.xlu1 %659 }
 0x1dd   : > { %v701_v25 = vmul.f32 %v1432_v38, %v690_v22  ;;  %v672_v32 = vmul.f32 %v1428_v35, %v660_v23  ;;  %v1091_v35 = vld [vmem:[%s1490_s1 + $0x3] ss:$0 sm:$0xff] }
 0x1df   : > { %v703_v27 = vadd.f32 %v701_v25, %v687_v24  ;;  %v688_v38 = vadd.f32 %v686_v34, %v672_v32 }
 0x1e0   : > { %v748_v28 = vpop.permute.xlu0 %747  ;;  %v692_v29 = vpop.permute.xlu1 %691 }
 0x1e1   : > { %v709_v30 = vmul.f32 %v1090_v26, %v703_v27  ;;  %v702_v37 = vmul.f32 %v699_v50, %v692_v29  ;;  %v759_v41 = vmul.f32 %v753_v3, %v748_v28 }
 0x1e3   : > { %v745_v31 = vadd.f32 %v743_v2, %v709_v30  ;;  %v704_v47 = vadd.f32 %v702_v37, %v688_v38  ;;  %v775_v49 = vadd.f32 %v773_v44, %v759_v41 }
 0x1e4   : > { %v750_v33 = vpop.permute.xlu1 %749  ;;  %v778_v39 = vpop.permute.xlu0 %777 }
 0x1e5   : > { %v760_v40 = vmul.f32 %v757_v57, %v750_v33  ;;  %v789_v45 = vmul.f32 %v783_v13, %v778_v39  ;;  %v710_v53 = vmul.f32 %v1090_v26, %v704_v47 }
 0x1e7   : > { %v776_v48 = vadd.f32 %v774_v42, %v760_v40  ;;  %v791_v52 = vadd.f32 %v789_v45, %v775_v49  ;;  %v746_v55 = vadd.f32 %v744_v11, %v710_v53 }
 0x1e8   : > { %v780_v43 = vpop.permute.xlu1 %779 }
 0x1e9   : > { %v790_v46 = vmul.f32 %v787_v12, %v780_v43  ;;  %v797_v54 = vmul.f32 %v1091_v35, %v791_v52 }
 0x1eb   : > { %v792_v51 = vadd.f32 %v790_v46, %v776_v48  ;;  %v799_v57 = vadd.f32 %v797_v54, %v745_v31 }
 0x1ed   : > { %v798_v36 = vmul.f32 %v1091_v35, %v792_v51 }
 0x1ef   : > { %v800_v56 = vadd.f32 %v798_v36, %v746_v55 }
 0x1f1   : > { %v806_v50 = vpop.permute.xlu0 %805 }
 0x1f2   : > { %v813_v60 = vadd.f32 %v806_v50, %v799_v57 }
 0x1f4   : > { %vm815_vm6 = vcmp.gt.f32.partialorder %v813_v60, 0.0 }
 0x1f5   : > { %v811_v58 = vpop.permute.xlu1 %810  ;;  %v827_v61 = vpop.permute.xlu0 %826 }
 0x1f6   : > { %v814_v59 = vadd.f32 %v811_v58, %v800_v56 }
 0x1f8   : > { %v830_v62 = vmul.f32 %v827_v61, %v814_v59  ;;  %vm816_vm5 = vcmp.gt.f32.partialorder %v814_v59, 0.0 }
 0x1f9   : > { %v822_v63 = vpop.permute.xlu1 %821 }
 0x1fa   : > { %v829_v0 = vmul.f32 %v822_v63, %v813_v60  ;;  %v832_v3 = vsel %vm816_vm5, %v814_v59, %v830_v62 }
 0x1fc   : > { %v831_v2 = vsel %vm815_vm6, %v813_v60, %v829_v0 }
 0x1fd   : > { %v834_v4 = vpack.c.bf16 %v832_v3, %v831_v2  ;;  %v839_v6 = vpop.permute.xlu1 %838 }
 0x1ff   : > { %1116 = vmatpush3.bf16.msra.mxu1 %v834_v4 }
 0x202   : > { %1118 = vmatmul.mubr.msk.bf16.vlgmr.msra.gmra.mxu1 %vm841_vm7, %v833_v5 }
 0x2c2   : > { %v879_v7 = vpop.f32.mrf.mxu1 }
 0x2c3   : > { %v880_v8 = vadd.f32 %v879_v7, %v839_v6 }
 0x2c4   : > { %v1119_v9 = vpop.f32.mrf.mxu1  ;;  %890 = sbr.rel (%p1093_p6) target bundleno = 720 (0x2d0), region = 98 }
 0x2c5   : > { %v885_v10 = vadd.f32 %v880_v8, %v1376_v1 }
 0x2c6   : > { %v882_v11 = vpop.f32.mrf.mxu1 }
 0x2c7   : > { %886 = vst [vmem:[#allocation2] sm:$0xff] %v885_v10 }
 0x2c8   : > { %v1120_v12 = vpop.f32.mrf.mxu1 }
 0x2ce   : > { %v891_v13 = vld [vmem:[#allocation2] sm:$0xff] }
 0x2cf   : > { %892 = vst [vmem:[#allocation4] sm:$0xff] %v891_v13 }
 0x2d0 PF: > { %s1507_s24 = sadd.s32 4294967295, %s1238_s15   ;;  %s1255_s27 = smov [#allocation4]  }
 0x2d1   : > { %p1465_p7 = scmp.eq.s32.totalorder %s1507_s24, 1  ;;  %s902_s28 = sshll.u32 %s1255_s27, 4  ;;  %s903_s28 = int_to_ptr.vmem [resolvable:$true] %s902_s28 }
 0x2d2   : > { %s1186_s30 = scalar_lea.vmem %s903_s28, 128  ;;  %p1193_p11 = scmp.lt.s32.totalorder %s903_s28, %s903_s28 }
 0x2d3   : > { %p1187_p8 = scmp.ne.s32.totalorder %s903_s28, %s1186_s30  ;;  %p1194_p12 = scmp.lt.s32.totalorder %s1186_s30, %s1186_s30 }
 0x2d5   : > { %p1188_p9 = pnand %p1187_p8, %p1465_p7  ;;  %p1195_p13 = por %p1194_p12, %p1193_p11 }
 0x2d7   : > { %p1189_p10 = pneg %p1188_p9 }
 0x2d9   : > { %p1196_p0 = pnand %p1195_p13, %p1189_p10 }
 0x2db   : > { %1199 = shalt.err (!%p1196_p0)
}
 0x2dc   : > { %1122 = dma.vmem_to_hbm [thread:$0]  (%p1465_p7), %s903_s28, 128, %s1499_s10, [#allocation5]  }
 0x2dd   : > { %1225 = dma.done.wait (%p1465_p7), [#allocation5], 128  }
 0x2de   : > { %1227 = vsyncadd (%p1465_p7), [#allocation5], 4294967168 }
 0x2df PF: > { %s21_s15 = sadd.s32 1, %s1238_s15   ;;  %s1509_s16 = sld [smem:[#allocation9_spill]] }
 0x2e0   : > { %p18_p1 = scmp.ge.s32.totalorder %s21_s15, 4   ;;  %s1510_s13 = smov %s1234_s14 }
 0x2e2   :  { %20 = sbr.rel (!%p18_p1) target bundleno = 6 (0x6), region = 159 }
 0x2e5   : > { %s1511_s14 = smov %s1509_s16 }
 0x2e7   :  { %915 = vsyncpa [#allocation5], 1 }
 0x2e8   :  { %917 = vsyncpa [#allocation5 + $0x1], 1 }
 0x2e9   :  { %918 = vsyncmov [#allocation3] }
 0x2ec   :  { %s919_s17 = vpop.sfrf %918 }
 0x2ed   :  { %p1098_p2 = scmp.ne.s32.totalorder %s919_s17, 0 }
 0x2ef   :  { %923 = shalt.err (%p1098_p2)  }

</bundles_post_ra>
